<compile_context>
chip_gen: v6e
topology: v6e:2x2x1
jax: 0.10.0
libtpu: 0.0.40
codegen_flags: <defaults>
</compile_context>

<pallas_src>
import jax
import jax.numpy as jnp
from jax import lax
from jax.experimental import pallas as pl
from jax.experimental.pallas import tpu as pltpu


def _round_up(x, m):
    return ((x + m - 1) // m) * m


# ----------------------------- Pallas kernel --------------------------------

def _erg_partial_kernel(fused_ref, kxb_ref, kyb_ref, ck_ref, misc_ref):
    """Accumulates per-split partial sums.

    fused_ref : (8, Tt)       rows [x, y, c0, c1, 0, 0, 0, 0], time on lanes
    kxb_ref   : (nf_pad, Tt)  lane-replicated x frequencies (resident)
    kyb_ref   : (nf_pad, Tt)  lane-replicated y frequencies (resident)
    ck_ref    : (nf_pad, nf_pad) output accumulator: sum_t cos(kx_i x)cos(ky_j y)
    misc_ref  : (8, 128)      output accumulator: rows 0,1 = sum c0^2, c1^2;
                              rows 2,3 = boundary sums for x, y (column 0)
    """
    i = pl.program_id(1)

    @pl.when(i == 0)
    def _init():
        ck_ref[...] = jnp.zeros_like(ck_ref)
        misc_ref[...] = jnp.zeros_like(misc_ref)

    # ---- separable cos factors (VALU) + time contraction (MXU) -------------
    x = fused_ref[0:1, :]                              # (1, Tt)
    y = fused_ref[1:2, :]                              # (1, Tt)
    cx = jnp.cos(kxb_ref[...] * x)                     # (nf_pad, Tt)
    cy = jnp.cos(kyb_ref[...] * y)                     # (nf_pad, Tt)
    ck_ref[...] += lax.dot_general(
        cx, cy, (((1,), (1,)), ((), ())),
        preferred_element_type=jnp.float32)            # (nf_pad, nf_pad)

    # ---- control-effort and boundary partial sums (tiny vs cos work) -------
    c = fused_ref[2:4, :]                              # (2, Tt) controls
    misc_ref[0:2, 0:1] += jnp.sum(c * c, axis=1, keepdims=True)

    xy = fused_ref[0:2, :]                             # (2, Tt) x, y
    misc_ref[2:4, 0:1] += jnp.sum(
        jnp.maximum(xy - 1.0, 0.0) + jnp.maximum(-xy, 0.0),
        axis=1, keepdims=True)


# ------------------------------ wrapper --------------------------------------

def erg_loss_pallas(traj, controls, k, lambdak, hk, phik, end_pose, *,
                    erg_wt, transl_vel_wt, ang_vel_wt, bound_wt, end_pose_wt,
                    t_tile=8192, time_splits=2):
    """traj: (T, S); controls: (Tc, 2); k: (K, 2) from a square meshgrid;
    lambdak/hk/phik: (K,); end_pose: (S,).  Returns scalar loss (float32)."""
    traj = jnp.asarray(traj, jnp.float32)
    controls = jnp.asarray(controls, jnp.float32)
    k = jnp.asarray(k, jnp.float32)
    lambdak = jnp.asarray(lambdak, jnp.float32)
    hk = jnp.asarray(hk, jnp.float32)
    phik = jnp.asarray(phik, jnp.float32)
    end_pose = jnp.asarray(end_pose, jnp.float32)

    T, _ = traj.shape
    Tc = controls.shape[0]
    K = int(k.shape[0])
    nf = int(round(K ** 0.5))
    assert nf * nf == K, "k must come from a square num_freqs x num_freqs grid"
    nf_pad = _round_up(nf, 8)

    # ---- time tiling / split geometry (time lives on the lane dim) ---------
    t_tile = _round_up(max(128, min(int(t_tile), _round_up(T, 128))), 128)
    n_split = int(time_splits) if pl.cdiv(T, t_tile) >= 2 else 1
    n_split = max(n_split, 1)
    T_pad = _round_up(T, t_tile * n_split)
    num_tiles = T_pad // t_tile
    inner = num_tiles // n_split
    pad_count = T_pad - T
    assert Tc <= T_pad, "controls longer than padded trajectory"

    # ---- fused lane-dense input: rows [x, y, c0, c1, 0, 0, 0, 0] -----------
    fused = jnp.zeros((8, T_pad), jnp.float32)
    fused = fused.at[0, :T].set(traj[:, 0])
    fused = fused.at[1, :T].set(traj[:, 1])
    fused = fused.at[2, :Tc].set(controls[:, 0])
    fused = fused.at[3, :Tc].set(controls[:, 1])

    # ---- separable frequencies, lane-replicated, resident in VMEM ----------
    kx_u = k[0::nf, 0]                                   # (nf,) = pi * i
    ky_u = k[0:nf, 1]                                    # (nf,) = pi * j
    kx_p = jnp.pad(kx_u, (0, nf_pad - nf))               # padded rows -> cos=1
    ky_p = jnp.pad(ky_u, (0, nf_pad - nf))               # (ignored at combine)
    kxb = jnp.broadcast_to(kx_p[:, None], (nf_pad, t_tile))
    kyb = jnp.broadcast_to(ky_p[:, None], (nf_pad, t_tile))

    cost = pl.CostEstimate(
        flops=int(2 * nf_pad * nf_pad * T_pad + 8 * nf_pad * T_pad + 12 * T_pad),
        transcendentals=int(2 * nf_pad * T_pad),
        bytes_accessed=int(4 * (fused.size + kxb.size + kyb.size
                                + n_split * (nf_pad * nf_pad + 8 * 128))))

    ck_parts, misc_parts = pl.pallas_call(
        _erg_partial_kernel,
        grid=(n_split, inner),
        in_specs=[
            pl.BlockSpec((8, t_tile), lambda s, i: (0, s * inner + i)),
            pl.BlockSpec((nf_pad, t_tile), lambda s, i: (0, 0)),
            pl.BlockSpec((nf_pad, t_tile), lambda s, i: (0, 0)),
        ],
        out_specs=(
            pl.BlockSpec((nf_pad, nf_pad), lambda s, i: (s, 0)),
            pl.BlockSpec((8, 128), lambda s, i: (s, 0)),
        ),
        out_shape=(
            jax.ShapeDtypeStruct((n_split * nf_pad, nf_pad), jnp.float32),
            jax.ShapeDtypeStruct((n_split * 8, 128), jnp.float32),
        ),
        compiler_params=pltpu.CompilerParams(
            dimension_semantics=("parallel", "arbitrary")),
        cost_estimate=cost,
    )(fused, kxb, kyb)

    # ---- tiny O(K) combine + weighting in plain JAX (per perf review) ------
    ck_mat = ck_parts.reshape(n_split, nf_pad, nf_pad).sum(axis=0)
    # padded time columns (x = y = 0) added exactly 1.0 to every (i, j).
    ck = (ck_mat[:nf, :nf].reshape(-1) - jnp.float32(pad_count)) \
        / (jnp.float32(T) * hk)
    erg_metric = jnp.sum(lambdak * jnp.square(phik - ck))

    misc = misc_parts.reshape(n_split, 8, 128).sum(axis=0)
    control0 = misc[0, 0] / jnp.float32(Tc)
    control1 = misc[1, 0] / jnp.float32(Tc)
    bound_metric = misc[2, 0] + misc[3, 0]

    end_metric = jnp.sum(jnp.square(end_pose - traj[T - 1, :]))

    return (erg_wt * erg_metric
            + transl_vel_wt * control0
            + ang_vel_wt * control1
            + bound_wt * bound_metric
            + end_pose_wt * end_metric)


# -------------------- set_up_calcs (plain-JAX setup glue) --------------------

def set_up_calcs(num_freqs, num_pixels, pdf):
    """Mirrors ErgLoss.set_up_calcs / get_k / get_lambdak (float32)."""
    idx = jnp.arange(num_freqs, dtype=jnp.float32)
    k1, k2 = jnp.meshgrid(idx, idx, indexing='ij')
    k = jnp.pi * jnp.stack([k1.ravel(), k2.ravel()], axis=1)        # (K, 2)

    lambdak = (1.0 + jnp.sum((k / jnp.pi) ** 2, axis=1)) ** (-4.0 / 2.0)

    denom = jnp.where(k == 0.0, 1.0, 4.0 * k)
    _hk = jnp.where(k == 0.0, 1.0, (2.0 * k + jnp.sin(2.0 * k)) / denom)
    hk = jnp.sqrt(jnp.prod(_hk, axis=1))                            # (K,)

    lin = jnp.linspace(0.0, 1.0, num_pixels, dtype=jnp.float32)
    X, Y = jnp.meshgrid(lin, lin, indexing='xy')
    s = jnp.stack([X.ravel(), Y.ravel()], axis=1)                   # (P^2, 2)

    fk_map = (jnp.cos(s[None, :, 0] * k[:, 0:1]) *
              jnp.cos(s[None, :, 1] * k[:, 1:2]))                   # (K, P^2)
    phik = fk_map @ pdf
    phik = phik / phik[0]
    phik = phik / hk
    return k, lambdak, hk, phik


# ------------------------ plain-JAX reference forward ------------------------

def erg_loss_ref(traj, controls, k, lambdak, hk, phik, end_pose, *,
                 erg_wt, transl_vel_wt, ang_vel_wt, bound_wt, end_pose_wt):
    fk_traj = (jnp.cos(traj[:, 0:1] * k[None, :, 0]) *
               jnp.cos(traj[:, 1:2] * k[None, :, 1]))               # (T, K)
    ck = jnp.mean(fk_traj, axis=0) / hk
    erg_metric = jnp.sum(lambdak * jnp.square(phik - ck))
    control_metric = jnp.mean(controls ** 2, axis=0)
    xy = traj[:, :2]
    bound_metric = jnp.sum(jnp.maximum(xy - 1.0, 0.0) + jnp.maximum(-xy, 0.0))
    end_metric = jnp.sum((end_pose - traj[-1, :]) ** 2)
    return (erg_wt * erg_metric
            + transl_vel_wt * control_metric[0]
            + ang_vel_wt * control_metric[1]
            + bound_wt * bound_metric
            + end_pose_wt * end_metric)


# ----------------------------------- main ------------------------------------

if __name__ == "__main__":
    num_freqs = 5        # K = 25 -> nf_pad = 8 rows of separable cos factors
    num_pixels = 16      # spatial map is 16x16
    S = 3                # state dim [x, y, theta]
    weights = dict(erg_wt=1.0, transl_vel_wt=0.1, ang_vel_wt=0.05,
                   bound_wt=10.0, end_pose_wt=1.0)
    end_pose = jnp.array([0.9, 0.9, 0.0], dtype=jnp.float32)

    key = jax.random.PRNGKey(0)

    # deterministic synthetic pdf over the map (positive, normalized)
    pdf = jax.random.uniform(jax.random.fold_in(key, 1),
                             (num_pixels * num_pixels,), dtype=jnp.float32,
                             minval=0.1, maxval=1.0)
    pdf = pdf / jnp.sum(pdf)

    # setup buffers (ErgLoss.__init__ / set_up_calcs)
    k, lambdak, hk, phik = set_up_calcs(num_freqs, num_pixels, pdf)

    # configs: (T, t_tile, time_splits)
    #   (1000, 256, 2): multi-tile, 2-way split, time padding -> exercises the
    #                   parallel partial-output path and the pad correction
    #   (160, 8192, 2): whole trajectory in one tile (split auto-clamped to 1)
    #   (700, 128, 1):  many tiles, single split -> long accumulation chain
    for cfg_id, (T, t_tile, splits) in enumerate([(1000, 256, 2),
                                                  (160, 8192, 2),
                                                  (700, 128, 1)]):
        ks = jax.random.split(jax.random.fold_in(key, 100 + cfg_id), 2)
        traj = jax.random.uniform(ks[0], (T, S), dtype=jnp.float32,
                                  minval=-0.1, maxval=1.1)
        controls = jax.random.normal(ks[1], (T, 2), dtype=jnp.float32)

        loss_kernel = erg_loss_pallas(traj, controls, k, lambdak, hk, phik,
                                      end_pose, t_tile=t_tile,
                                      time_splits=splits, **weights)
        loss_kernel = jax.block_until_ready(loss_kernel)

        loss_ref = jax.block_until_ready(
            erg_loss_ref(traj, controls, k, lambdak, hk, phik, end_pose,
                         **weights))

        assert jnp.isfinite(loss_kernel)
        rel = abs(float(loss_kernel) - float(loss_ref)) / max(
            1.0, abs(float(loss_ref)))
        assert rel <= 2e-3, (T, t_tile, splits,
                             float(loss_kernel), float(loss_ref))

    print("KERNEL_OK")
</pallas_src>

<mosaic_0001>
module attributes {stable_mosaic.version = 11 : i64} {
  func.func @_erg_partial_kernel(%arg0: i32, %arg1: i32, %arg2: memref<8x256xf32, #tpu.memory_space<vmem>>, %arg3: memref<8x256xf32, #tpu.memory_space<vmem>>, %arg4: memref<8x256xf32, #tpu.memory_space<vmem>>, %arg5: memref<8x8xf32, #tpu.memory_space<vmem>>, %arg6: memref<8x128xf32, #tpu.memory_space<vmem>>) attributes {dimension_semantics = [#tpu.dimension_semantics<parallel>, #tpu.dimension_semantics<arbitrary>], iteration_bounds = array<i64: 2, 2>, scalar_prefetch = 0 : i64, scratch_operands = 0 : i64, tpu.core_type = #tpu.core_type<tc>, window_params = [{transform_indices = @transform_0, window_bounds = array<i64: 8, 256>}, {pipeline_mode = #tpu.pipeline_mode<synchronous>, transform_indices = @transform_1, window_bounds = array<i64: 8, 256>}, {pipeline_mode = #tpu.pipeline_mode<synchronous>, transform_indices = @transform_2, window_bounds = array<i64: 8, 256>}, {transform_indices = @transform_3, window_bounds = array<i64: 8, 8>}, {transform_indices = @transform_4, window_bounds = array<i64: 8, 128>}]} {
    %c0_i32 = arith.constant 0 : i32
    %0 = arith.cmpi eq, %arg1, %c0_i32 : i32
    %1 = arith.extui %0 : i1 to i32
    %c0_i32_0 = arith.constant 0 : i32
    %2 = arith.cmpi ne, %1, %c0_i32_0 : i32
    scf.if %2 {
      %cst_28 = arith.constant 0.000000e+00 : f32
      %39 = vector.broadcast %cst_28 : f32 to vector<8x8xf32>
      %c0_29 = arith.constant 0 : index
      %c0_30 = arith.constant 0 : index
      %40 = vector.load %arg5[%c0_29, %c0_30] : memref<8x8xf32, #tpu.memory_space<vmem>>, vector<8x8xf32>
      tpu.vector_store %arg5[%c0_29, %c0_30], %39 {strides = array<i32>} : memref<8x8xf32, #tpu.memory_space<vmem>>, vector<8x8xf32>,
      %cst_31 = arith.constant 0.000000e+00 : f32
      %41 = vector.broadcast %cst_31 : f32 to vector<8x128xf32>
      %c0_32 = arith.constant 0 : index
      %c0_33 = arith.constant 0 : index
      %42 = vector.load %arg6[%c0_32, %c0_33] : memref<8x128xf32, #tpu.memory_space<vmem>>, vector<8x128xf32>
      tpu.vector_store %arg6[%c0_32, %c0_33], %41 {strides = array<i32>} : memref<8x128xf32, #tpu.memory_space<vmem>>, vector<8x128xf32>,
    } else {
    }
    %c0 = arith.constant 0 : index
    %c0_1 = arith.constant 0 : index
    %3 = vector.load %arg2[%c0, %c0_1] : memref<8x256xf32, #tpu.memory_space<vmem>>, vector<1x256xf32>
    %c1 = arith.constant 1 : index
    %c0_2 = arith.constant 0 : index
    %4 = vector.load %arg2[%c1, %c0_2] : memref<8x256xf32, #tpu.memory_space<vmem>>, vector<1x256xf32>
    %c0_3 = arith.constant 0 : index
    %c0_4 = arith.constant 0 : index
    %5 = vector.load %arg3[%c0_3, %c0_4] : memref<8x256xf32, #tpu.memory_space<vmem>>, vector<8x256xf32>
    %6 = vector.broadcast %3 : vector<1x256xf32> to vector<8x256xf32>
    %7 = arith.mulf %5, %6 : vector<8x256xf32>
    %8 = math.cos %7 : vector<8x256xf32>
    %c0_5 = arith.constant 0 : index
    %c0_6 = arith.constant 0 : index
    %9 = vector.load %arg4[%c0_5, %c0_6] : memref<8x256xf32, #tpu.memory_space<vmem>>, vector<8x256xf32>
    %10 = vector.broadcast %4 : vector<1x256xf32> to vector<8x256xf32>
    %11 = arith.mulf %9, %10 : vector<8x256xf32>
    %12 = math.cos %11 : vector<8x256xf32>
    %c0_7 = arith.constant 0 : index
    %c0_8 = arith.constant 0 : index
    %13 = vector.load %arg5[%c0_7, %c0_8] : memref<8x8xf32, #tpu.memory_space<vmem>>, vector<8x8xf32>
    %cst = arith.constant dense<0.000000e+00> : vector<8x8xf32>
    %14 = tpu.matmul %8, %12, %cst {dimension_numbers = #tpu.dot_dimension_numbers<[1], [1], [0], [0], [0, 0, 1, 0], [], []>} : vector<8x256xf32>, vector<8x256xf32>, vector<8x8xf32> -> vector<8x8xf32>
    %15 = arith.addf %13, %14 : vector<8x8xf32>
    %c0_9 = arith.constant 0 : index
    %c0_10 = arith.constant 0 : index
    %16 = vector.load %arg5[%c0_9, %c0_10] : memref<8x8xf32, #tpu.memory_space<vmem>>, vector<8x8xf32>
    tpu.vector_store %arg5[%c0_9, %c0_10], %15 {strides = array<i32>} : memref<8x8xf32, #tpu.memory_space<vmem>>, vector<8x8xf32>,
    %c2 = arith.constant 2 : index
    %c0_11 = arith.constant 0 : index
    %17 = vector.load %arg2[%c2, %c0_11] : memref<8x256xf32, #tpu.memory_space<vmem>>, vector<2x256xf32>
    %c0_12 = arith.constant 0 : index
    %c0_13 = arith.constant 0 : index
    %18 = vector.load %arg6[%c0_12, %c0_13] : memref<8x128xf32, #tpu.memory_space<vmem>>, vector<2x1xf32>
    %19 = arith.mulf %17, %17 : vector<2x256xf32>
    %cst_14 = arith.constant dense<0.000000e+00> : vector<2xf32>
    %20 = vector.multi_reduction <add>, %19, %cst_14 [1] : vector<2x256xf32> to vector<2xf32>
    %21 = vector.shape_cast %20 : vector<2xf32> to vector<2x1xf32>
    %22 = arith.addf %18, %21 : vector<2x1xf32>
    %c0_15 = arith.constant 0 : index
    %c0_16 = arith.constant 0 : index
    %23 = vector.load %arg6[%c0_15, %c0_16] : memref<8x128xf32, #tpu.memory_space<vmem>>, vector<2x1xf32>
    tpu.vector_store %arg6[%c0_15, %c0_16], %22 {strides = array<i32>} : memref<8x128xf32, #tpu.memory_space<vmem>>, vector<2x1xf32>,
    %c0_17 = arith.constant 0 : index
    %c0_18 = arith.constant 0 : index
    %24 = vector.load %arg2[%c0_17, %c0_18] : memref<8x256xf32, #tpu.memory_space<vmem>>, vector<2x256xf32>
    %c2_19 = arith.constant 2 : index
    %c0_20 = arith.constant 0 : index
    %25 = vector.load %arg6[%c2_19, %c0_20] : memref<8x128xf32, #tpu.memory_space<vmem>>, vector<2x1xf32>
    %cst_21 = arith.constant 1.000000e+00 : f32
    %26 = vector.broadcast %cst_21 : f32 to vector<2x256xf32>
    %27 = arith.subf %24, %26 : vector<2x256xf32>
    %cst_22 = arith.constant 0.000000e+00 : f32
    %28 = vector.broadcast %cst_22 : f32 to vector<2x256xf32>
    %29 = arith.maximumf %27, %28 : vector<2x256xf32>
    %cst_23 = arith.constant 0.000000e+00 : f32
    %30 = vector.broadcast %cst_23 : f32 to vector<2x256xf32>
    %31 = arith.subf %30, %24 : vector<2x256xf32>
    %cst_24 = arith.constant 0.000000e+00 : f32
    %32 = vector.broadcast %cst_24 : f32 to vector<2x256xf32>
    %33 = arith.maximumf %31, %32 : vector<2x256xf32>
    %34 = arith.addf %29, %33 : vector<2x256xf32>
    %cst_25 = arith.constant dense<0.000000e+00> : vector<2xf32>
    %35 = vector.multi_reduction <add>, %34, %cst_25 [1] : vector<2x256xf32> to vector<2xf32>
    %36 = vector.shape_cast %35 : vector<2xf32> to vector<2x1xf32>
    %37 = arith.addf %25, %36 : vector<2x1xf32>
    %c2_26 = arith.constant 2 : index
    %c0_27 = arith.constant 0 : index
    %38 = vector.load %arg6[%c2_26, %c0_27] : memref<8x128xf32, #tpu.memory_space<vmem>>, vector<2x1xf32>
    tpu.vector_store %arg6[%c2_26, %c0_27], %37 {strides = array<i32>} : memref<8x128xf32, #tpu.memory_space<vmem>>, vector<2x1xf32>,
    return
  }
  func.func @transform_0(%arg0: i32, %arg1: i32) -> (i32, i32) {
    %c2_i32 = arith.constant 2 : i32
    %0 = arith.muli %arg0, %c2_i32 : i32
    %1 = arith.addi %0, %arg1 : i32
    %c0_i32 = arith.constant 0 : i32
    %c0_i32_0 = arith.constant 0 : i32
    return %c0_i32, %1 : i32, i32
  }
  func.func @transform_1(%arg0: i32, %arg1: i32) -> (i32, i32) {
    %c0_i32 = arith.constant 0 : i32
    %c0_i32_0 = arith.constant 0 : i32
    %c0_i32_1 = arith.constant 0 : i32
    return %c0_i32, %c0_i32_0 : i32, i32
  }
  func.func @transform_2(%arg0: i32, %arg1: i32) -> (i32, i32) {
    %c0_i32 = arith.constant 0 : i32
    %c0_i32_0 = arith.constant 0 : i32
    %c0_i32_1 = arith.constant 0 : i32
    return %c0_i32, %c0_i32_0 : i32, i32
  }
  func.func @transform_3(%arg0: i32, %arg1: i32) -> (i32, i32) {
    %c0_i32 = arith.constant 0 : i32
    %c0_i32_0 = arith.constant 0 : i32
    return %arg0, %c0_i32 : i32, i32
  }
  func.func @transform_4(%arg0: i32, %arg1: i32) -> (i32, i32) {
    %c0_i32 = arith.constant 0 : i32
    %c0_i32_0 = arith.constant 0 : i32
    return %arg0, %c0_i32 : i32, i32
  }
}

</mosaic_0001>

<bundles_post_ra>
// kernel: tpu_custom_call.1
= control target key start
LH: loop header
LB: loop body
LE: loop exit
PB: predicated region body
PF: predicated region fallthrough
CT: control target
= control target key end

     0   :  { %s2012_s0 = inlined_call_operand.hbm [shape: f32[8,1024], index: 0, kind: input, shape index: {}]   ;;  %s2013_s1 = inlined_call_operand.hbm [shape: f32[8,256], index: 1, kind: input, shape index: {}]   ;;  %s2014_s2 = inlined_call_operand.hbm [shape: f32[8,256], index: 2, kind: input, shape index: {}]   ;;  %s2015_s3 = inlined_call_operand.vmem [shape: f32[16,8], index: 3, kind: output, shape index: {0}]   ;;  %s2016_s4 = inlined_call_operand.hbm [shape: f32[16,128], index: 4, kind: output, shape index: {1}]  }
   0x1   :  { %2028 = sst [smem:[#allocation17_spill]] %s2013_s1 }
   0x2   :  { %2029 = sst [smem:[#allocation18_spill]] %s2014_s2 }
   0x3   :  { %2030 = sst [smem:[#allocation19_spill]] %s2015_s3 }
   0x4   :  { %2031 = sst [smem:[#allocation20_spill]] %s2016_s4 }
   0x5   :  { %10 = vsyncpa [#allocation3], 0 }
   0x6   :  { %12 = vsyncpa [#allocation3 + $0x1], 0 }
   0x7   :  { %13 = vsyncpa [#allocation6], 0 }
   0x8   :  { %14 = vsyncpa [#allocation4], 0 }
   0x9   :  { %16 = vsyncpa [#allocation4 + $0x1], 0  ;;  %s1429_s15 = smov 0   ;;  %s1431_s16 = smov 0  }
   0xa   :  { %s1433_s17 = smov 0   ;;  %s1435_s18 = smov 0  }
   0xb   :  { %s1437_s19 = smov 0   ;;  %s1439_s20 = smov 0  }
   0xc   :  { %s1441_s21 = smov 0   ;;  %s1443_s22 = smov 0  }
   0xd   :  { %s1445_s23 = smov 0   ;;  %s1447_s24 = smov 0  }
   0xe   :  { %s1449_s25 = smov 0  }
   0xf LB: > { %2032 = sst [smem:[#allocation12_spill]] %s1351_s15  ;;  %s982_s26 = sadd.s32 4294967295, %s1391_s25   ;;  %s1391_s25 = sphi %s1449_s25, %s22_s25   ;;  %s1387_s24 = sphi %s1447_s24, %s2074_s24   ;;  %s1383_s23 = sphi %s1445_s23, %s2073_s23   ;;  %s1379_s22 = sphi %s1443_s22, %s2072_s22   ;;  %s1375_s21 = sphi %s1441_s21, %s2065_s21   ;;  %s1371_s20 = sphi %s1439_s20, %s2071_s20   ;;  %s1367_s19 = sphi %s1437_s19, %s2070_s19   ;;  %s1363_s18 = sphi %s1435_s18, %s2069_s18   ;;  %s1359_s17 = sphi %s1433_s17, %s2068_s17   ;;  %s1355_s16 = sphi %s1431_s16, %s2067_s16   ;;  %s1351_s15 = sphi %s1429_s15, %s2066_s15  }
  0x10   : > { %2033 = sst [smem:[#allocation13_spill]] %s1375_s21  ;;  %s983_s27 = sadd.s32 4294967294, %s1391_s25  }
  0x11   : > { %2034 = sst [smem:[#allocation14_spill]] %s1383_s23  ;;  %p58_p0 = scmp.ne.s32.totalorder %s1367_s19, %s1363_s18 }
  0x12   : > { %p1485_p1 = scmp.eq.s32.totalorder %s982_s26, 0  ;;  %p149_p2 = scmp.ne.s32.totalorder %s1359_s17, %s1355_s16 }
  0x13   : > { %p150_p3 = scmp.eq.s32.totalorder %s982_s26, 3  ;;  %p155_p5 = scmp.ne.s32.totalorder %s1355_s16, %s1351_s15 }
  0x14   : > { %s2035_s28 = scalar_select %p1485_p1, 1, 0 }
  0x15   : > { %p1493_p4 = por %p1485_p1, %p58_p0  ;;  %p1499_p6 = por %p150_p3, %p149_p2 }
  0x16   : > { %p156_p7 = scmp.eq.s32.totalorder %s983_s27, 3  ;;  %p986_p8 = scmp.ge.s32.totalorder %s1391_s25, 1 }
  0x17   : > { %s2036_s29 = scalar_select %p1493_p4, 1, 0 }
  0x18   : > { %s2037_s30 = scalar_select %p1499_p6, 1, 0 }
  0x19   : > { %p163_p9 = scmp.lt.s32.totalorder %s1391_s25, 5  ;;  %p1505_p10 = por %p156_p7, %p155_p5 }
  0x1a   : > { %2038 = sst [smem:[#allocation15_spill]] %s2037_s30  ;;  %s1393_s7 = smov [#allocation5]  }
  0x1b   : > { %s2039_s5 = scalar_select %p1505_p10, 1, 0 }
  0x1c   : > { %p1509_p11 = pnand %p986_p8, %p163_p9  ;;  %s176_s8 = sshll.u32 %s1393_s7, 4  ;;  %s177_s8 = int_to_ptr.vmem [resolvable:$true] %s176_s8 }
  0x1d   : > { %2040 = sst [smem:[#allocation16_spill]] %s2039_s5  ;;  %s1394_s10 = smov [#allocation7]  }
  0x1e   : > { %s2041_s6 = scalar_select %p1509_p11, 1, 0 }
  0x1f   : > { %p1053_p12 = pneg %p1509_p11  ;;  %s187_s11 = sshll.u32 %s1394_s10, 4  ;;  %s188_s11 = int_to_ptr.vmem [resolvable:$true] %s187_s11 }
  0x20   : > { %s1198_s12 = scalar_lea.vmem %s177_s8, 256  ;;  %p1206_p7 = scmp.lt.s32.totalorder %s177_s8, %s177_s8 }
  0x21   : > { %p1517_p13 = pnand %p1053_p12, %p1485_p1  ;;  %p1199_p2 = scmp.ne.s32.totalorder %s177_s8, %s1198_s12 }
  0x22   : > { %p1207_p8 = scmp.lt.s32.totalorder %s1198_s12, %s1198_s12 }
  0x23   : > { %p1189_p0 = pneg %p1517_p13 }
  0x24   : > { %p1208_p9 = por %p1207_p8, %p1206_p7 }
  0x25   : > { %p1201_p3 = pnand %p1199_p2, %p1189_p0 }
  0x27   : > { %p1202_p5 = pneg %p1201_p3 }
  0x29   : > { %p1209_p12 = pnand %p1208_p9, %p1202_p5 }
  0x2b   : > { %1212 = shalt.err (!%p1209_p12)
}
  0x2c   : > { %s2043_s1 = sld [smem:[#allocation17_spill]]  ;;  %s1224_s18 = scalar_lea.vmem %s188_s11, 256 }
  0x2d   : > { %p1225_p10 = scmp.ne.s32.totalorder %s188_s11, %s1224_s18  ;;  %p1232_p2 = scmp.lt.s32.totalorder %s188_s11, %s188_s11 }
  0x2e   : > { %p1233_p3 = scmp.lt.s32.totalorder %s1224_s18, %s1224_s18 }
  0x2f   : > { %p1227_p6 = pnand %p1225_p10, %p1189_p0 }
  0x30   : > { %p1234_p4 = por %p1233_p3, %p1232_p2 }
  0x31   : > { %p1228_p1 = pneg %p1227_p6 }
  0x32   : > { %1056 = dma.hbm_to_vmem [thread:$0]  (!%p1517_p13), %s2043_s1, 256, %s177_s8, [#allocation6]  }
  0x33   : > { %p1235_p11 = pnand %p1234_p4, %p1228_p1 }
  0x35   : > { %1238 = shalt.err (!%p1235_p11)
}
  0x36   : > { %s2044_s2 = sld [smem:[#allocation18_spill]]  ;;  %s31_s7 = sadd.s32 1, %s1383_s23 }
  0x37   : > { %p32_p1 = scmp.ge.s32.totalorder %s31_s7, 2  ;;  %s34_s8 = sadd.s32 1, %s1387_s24 }
  0x38   : > { %s984_s9 = sshll.u32 %s1387_s24, 1  ;;  %s45_s10 = sadd.s32 1, %s1371_s20 }
  0x39   : > { %s2076_s7 = smov (%p32_p1, %s31_s7), 0  ;;  %s2078_s8 = smov (!%p32_p1, %s34_s8), %s1387_s24 }
  0x3a   : > { %s39_s12 = sadd.s32 %s1383_s23, %s984_s9  ;;  %p52_p4 = scmp.ne.s32.totalorder %s1371_s20, %s1367_s19 }
  0x3b   : > { %p36_p6 = scmp.ge.s32.totalorder %s2078_s8, 2  ;;  %p53_p10 = scmp.eq.s32.totalorder %s1391_s25, 0 }
  0x3c   : > { %1059 = dma.hbm_to_vmem [thread:$0]  (!%p1517_p13), %s2044_s2, 256, %s188_s11, [#allocation6]  }
  0x3d   : > { %s139_s13 = sadd.s32 1, %s1359_s17  ;;  %p1070_p11 = scmp.lt.s32.totalorder %s1391_s25, 4 }
  0x3e   : > { %s2080_s8 = smov (%p36_p6, %s2078_s8), 0  ;;  %p1554_p13 = por %p53_p10, %p52_p4 }
  0x3f   : > { %s198_s14 = sand.u32 1, %s1371_s20   ;;  %s985_s18 = sshll.u32 %s2080_s8, 1 }
  0x40   : > { %s136_s26 = ssub.s32 %s1387_s24, %s2080_s8  ;;  %s41_s27 = sadd.s32 %s985_s18, %s2076_s7 }
  0x41   : > { %p137_p0 = scmp.eq.s32.totalorder %s136_s26, 0  ;;  %s42_s9 = ssub.s32 %s39_s12, %s41_s27 }
  0x42   : > { %p43_p5 = scmp.eq.s32.totalorder %s42_s9, 0  ;;  %s990_s1 = sshll.u32 %s198_s14, 4 }
  0x43   : > { %s1564_s2 = scalar_select %p137_p0, %s1359_s17, %s139_s13  }
  0x44   : > { %s1567_s23 = scalar_select %p43_p5, %s1371_s20, %s45_s10  }
  0x45   : > { %s1024_s5 = sshll.u32 %s39_s12, 8  ;;  %s202_s21 = scalar_lea.vmem [#allocation2], %s990_s1 }
  0x46   : > { %s210_s30 = scalar_lea.hbm %s2012_s0, %s1024_s5  ;;  %s212_s3 = sshll.u32 %s202_s21, 4  ;;  %s213_s3 = int_to_ptr.vmem [resolvable:$true] %s212_s3 }
  0x47   : > { %p1576_p7 = pnand %p1070_p11, %p1554_p13  ;;  %s199_s26 = scalar_lea.sflag [#allocation3], %s198_s14 }
  0x48   : > { %s1252_s10 = scalar_lea.vmem %s213_s3, 256  ;;  %s1395_s12 = smov [#allocation2]  }
  0x49   : > { %p1241_p8 = pneg %p1576_p7  ;;  %p1253_p9 = scmp.ne.s32.totalorder %s213_s3, %s1252_s10 }
  0x4a   : > { %s1257_s4 = sshll.u32 %s1395_s12, 4  ;;  %s1258_s4 = int_to_ptr.vmem [resolvable:$false] %s1257_s4 }
  0x4b   : > { %p1255_p12 = pnand %p1253_p9, %p1241_p8  ;;  %s1259_s1 = scalar_lea.vmem %s1258_s4, 512 }
  0x4c   : > { %p1260_p3 = scmp.lt.s32.totalorder %s213_s3, %s1258_s4  ;;  %p1261_p1 = scmp.lt.s32.totalorder %s1259_s1, %s1252_s10 }
  0x4d   : > { %p1256_p2 = pneg %p1255_p12 }
  0x4e   : > { %p1262_p4 = por %p1261_p1, %p1260_p3 }
  0x50   : > { %p1263_p6 = pnand %p1262_p4, %p1256_p2 }
  0x52   : > { %1266 = shalt.err (!%p1263_p6)
}
  0x53   : > { %1063 = dma.hbm_to_vmem [thread:$0]  (!%p1576_p7), %s210_s30, 256, %s213_s3, %s199_s26  }
  0x54   : > { %p2047_p10 = scmp.ne.s32.totalorder %s2041_s6, 0 }
  0x55   : > { %s223_s15 = sand.u32 (!%p2047_p10), 1, %s1367_s19   ;;  %p2048_p11 = scmp.ne.s32.totalorder (!%p2047_p10), %s2036_s29, 0 }
  0x56   : > { %221 = sbr.rel (%p2047_p10) target bundleno = 458 (0x1ca), region = 32  ;;  %s995_s21 = sshll.u32 (!%p2047_p10), %s223_s15, 4 }
  0x57   : > { %s224_s5 = scalar_lea.sflag (!%p2047_p10), [#allocation3], %s223_s15  ;;  %s1587_s13 = scalar_lea.vmem (!%p2047_p10), [#allocation2], %s995_s21 }
  0x5b   : > { %1338 = dma.done.wait (%p2048_p11), %s224_s5, 256  }
  0x5c   : > { %1340 = vsyncadd (%p2048_p11), %s224_s5, 4294967040  ;;  %p2049_p13 = scmp.ne.s32.totalorder %s2035_s28, 0 }
  0x5e   : > { %1342 = dma.done.wait (%p2049_p13), [#allocation6], 512  }
  0x5f   : > { %1344 = vsyncadd (%p2049_p13), [#allocation6], 4294966784  ;;  %s261_s3 = sand.u32 1, %s1355_s16   ;;  %p267_p0 = scmp.lt.s32.totalorder %s1379_s22, 1 }
  0x60   : > { %s998_s30 = sshll.u32 %s261_s3, 3  ;;  %s2050_s29 = sld [smem:[#allocation19_spill]] }
  0x61   : > { %s268_s6 = scalar_select %p267_p0, %s1379_s22, 1 }
  0x62   : > { %s1607_s18 = scalar_lea.vmem [#allocation8], %s998_s30  ;;  %s2051_s26 = sld [smem:[#allocation13_spill]] }
  0x63   : > { %s999_s11 = sshll.u32 %s268_s6, 3 }
  0x66   : > { %s1605_s9 = scalar_lea.vmem %s2050_s29, %s999_s11 }
  0x68   : > { %p1000_p5 = scmp.ne.s32.totalorder %s2051_s26, 0 }
  0x6a   : > { %274 = sbr.rel (%p1000_p5) target bundleno = 113 (0x71), region = 48 }
  0x6f   : > { %vm275_vm0 = vcmask 64512   ;;  %v1396_v0 = vmov 0.0  }
  0x70   : > { %276 = vst.msk [vmem:[%s1605_s9] sm:$0xff] %vm275_vm0, %v1396_v0  ;;  %277 = vst [vmem:[%s1607_s18] sm:$0xff] %v1396_v0 }
  0x71 PF: > { %v284_v1 = vlaneseq  ;;  %v1001_v3 = vld [vmem:[%s1587_s13 + $0x1] ss:$8 sm:$0x3]  ;;  %v278_v4 = vld [vmem:[%s1587_s13] ss:$8 sm:$0x3] }
  0x72   : > { %v503_v7 = vld [vmem:[#allocation7 + $0x8] sm:$0xff]  ;;  %v502_v8 = vld [vmem:[#allocation7] sm:$0xff]  ;;  %v282_v11 = vld [vmem:[#allocation5 + $0x8] sm:$0xff]  ;;  %v1397_v46 = vmov 683565275   ;;  %s2058_s28 = sld [smem:[#allocation15_spill]] }
  0x73   : > { %v285_v2 = vshrl.u32 %v284_v1, 7  ;;  %v281_v30 = vld [vmem:[#allocation5] sm:$0xff]  ;;  %v1398_v48 = vmov 2475754826   ;;  %v1399_v50 = vmov 2131351028  }
  0x74   : > { %v1400_v52 = vmov 2102212464   ;;  %v1401_v54 = vmov 920167782   ;;  %v1402_v62 = vmov 1326507024  }
  0x75   : > { %v290_v5 = vsub.s32 1, %v285_v2  ;;  %v286_v6 = vsub.s32 0, %v285_v2  ;;  %s1021_s10 = sshll.u32 %s1379_s22, 7  ;;  %s856_s12 = sshll.u32 %s1607_s18, 4  ;;  %s857_s12 = int_to_ptr.vmem [resolvable:$true] %s856_s12 }
  0x76   : > { %s2059_s15 = sld [smem:[#allocation20_spill]]  ;;  %s1267_s30 = scalar_lea.vmem %s857_s12, 128 }
  0x77   : > { %v512_v9 = vrot.slane %v1001_v3, %v290_v5  ;;  %v508_v10 = vrot.slane %v1001_v3, %v286_v6  ;;  %v291_v12 = vrot.slane %v278_v4, %v290_v5  ;;  %v287_v28 = vrot.slane %v278_v4, %v286_v6  ;;  %p1268_p7 = scmp.ne.s32.totalorder %s857_s12, %s1267_s30  ;;  %s1403_s6 = smov [#allocation8]  }
  0x78   : > { %p2061_p8 = scmp.ne.s32.totalorder %s2058_s28, 0  ;;  %s1271_s11 = sshll.u32 %s1403_s6, 4  ;;  %s1272_s11 = int_to_ptr.vmem [resolvable:$false] %s1271_s11 }
  0x79   : > { %v1614_v13 = vmul.f32 %v512_v9, %v503_v7  ;;  %v1616_v14 = vmul.f32 %v508_v10, %v502_v8  ;;  %v1618_v15 = vmul.f32 %v291_v12, %v282_v11  ;;  %v1629_v36 = vmul.f32 %v287_v28, %v281_v30  ;;  %s1273_s22 = scalar_lea.vmem %s1272_s11, 256  ;;  %p1274_p2 = scmp.lt.s32.totalorder %s857_s12, %s1272_s11 }
  0x7a   : > { %p1269_p9 = pnand %p1268_p7, %p2061_p8  ;;  %p1275_p3 = scmp.lt.s32.totalorder %s1273_s22, %s1267_s30 }
  0x7b   : > { %v620_v16 = vand.u32 2147483647, %v1614_v13  ;;  %v623_v17 = vand.u32 2139095040, %v1614_v13  ;;  %v517_v18 = vand.u32 2147483647, %v1616_v14  ;;  %v520_v19 = vand.u32 2139095040, %v1616_v14 }
  0x7c   : > { %v402_v24 = vand.u32 2139095040, %v1618_v15  ;;  %v399_v40 = vand.u32 2147483647, %v1618_v15  ;;  %vm622_vm14 = vcmp.lt.s32.totalorder %v1614_v13, 0  ;;  %s2060_s5 = smov %s2059_s15  ;;  %s854_s21 = scalar_lea.hbm %s2059_s15, %s1021_s10 }
  0x7d   : > { %v624_v20 = vshrl.u32 %v623_v17, 23  ;;  %v627_v21 = vand.u32 8388607, %v620_v16  ;;  %v521_v22 = vshrl.u32 %v520_v19, 23  ;;  %v524_v23 = vand.u32 8388607, %v517_v18  ;;  %p1270_p12 = pneg %p1269_p9  ;;  %p1276_p1 = por %p1275_p3, %p1274_p2 }
  0x7e   : > { %v403_v27 = vshrl.u32 %v402_v24, 23 }
  0x7f   : > { %v1014_v25 = vadd.s32 4294967169, %v624_v20  ;;  %v1010_v26 = vadd.s32 4294967169, %v521_v22  ;;  %v628_v31 = vor.u32 8388608, %v627_v21  ;;  %v525_v32 = vor.u32 8388608, %v524_v23  ;;  %p1277_p4 = pnand %p1276_p1, %p1270_p12 }
  0x80   : > { %v1006_v34 = vadd.s32 4294967169, %v403_v27 }
  0x81   : > { %v630_v29 = vadd.s32 1, %v1014_v25  ;;  %v527_v33 = vadd.s32 1, %v1010_v26  ;;  %v1632_v41 = vshll.u32 %v628_v31, 8  ;;  %v1634_v43 = vshll.u32 %v525_v32, 8 }
  0x82   : > { %v1636_v44 = vadd.s32 1, %v1006_v34 }
  0x83   : > { %vm631_vm1 = vcmp.gt.s32.totalorder %v630_v29, 0  ;;  %vm528_vm2 = vcmp.gt.s32.totalorder %v527_v33, 0 }
  0x84   : > { %v632_v35 = vsel %vm631_vm1, %v630_v29, 0  ;;  %v529_v39 = vsel %vm528_vm2, %v527_v33, 0  ;;  %vm410_vm7 = vcmp.gt.s32.totalorder %v1636_v44, 0 }
  0x85   : > { %v633_v37 = vshrl.u32 %v632_v35, 5  ;;  %v634_v38 = vand.u32 31, %v632_v35  ;;  %v531_v42 = vand.u32 31, %v529_v39  ;;  %v1643_v56 = vshrl.u32 %v529_v39, 5 }
  0x87   : > { %v635_v45 = vsub.s32 32, %v634_v38  ;;  %v637_v47 = vshll.u32 %v1397_v46, %v634_v38  ;;  %v640_v49 = vshll.u32 %v1398_v48, %v634_v38  ;;  %v643_v51 = vshll.u32 %v1399_v50, %v634_v38 }
  0x88   : > { %v646_v53 = vshll.u32 %v1400_v52, %v634_v38  ;;  %v649_v55 = vshll.u32 %v1401_v54, %v634_v38  ;;  %vm652_vm3 = vcmp.lt.s32.totalorder %v633_v37, 1  ;;  %vm653_vm4 = vcmp.lt.s32.totalorder %v633_v37, 2 }
  0x89   : > { %v636_v57 = vshrl.u32 %v1397_v46, %v635_v45  ;;  %v638_v58 = vshrl.u32 %v1398_v48, %v635_v45  ;;  %v641_v59 = vshrl.u32 %v1399_v50, %v635_v45  ;;  %v644_v60 = vshrl.u32 %v1400_v52, %v635_v45 }
  0x8a   : > { %v647_v61 = vshrl.u32 %v1401_v54, %v635_v45  ;;  %v650_v63 = vshrl.u32 %v1402_v62, %v635_v45  ;;  %vm655_vm5 = vcmp.lt.s32.totalorder %v633_v37, 4  ;;  %v532_v3 = vsub.s32 32, %v531_v42 }
  0x8b   : > { %v639_v0 = vor.u32 %v638_v58, %v637_v47  ;;  %v642_v1 = vor.u32 %v641_v59, %v640_v49  ;;  %v645_v2 = vor.u32 %v644_v60, %v643_v51  ;;  %vm654_vm6 = vcmp.lt.s32.totalorder %v633_v37, 3 }
  0x8c   : > { %v648_v4 = vor.u32 %v647_v61, %v646_v53  ;;  %v651_v5 = vor.u32 %v650_v63, %v649_v55  ;;  %v534_v6 = vshll.u32 %v1397_v46, %v531_v42  ;;  %v537_v19 = vshll.u32 %v1398_v48, %v531_v42 }
  0x8d   : > { %v656_v7 = vsel %vm652_vm3, %v636_v57, %v639_v0  ;;  %v657_v8 = vsel %vm655_vm5, %v645_v2, 2102212464  ;;  %v660_v9 = vsel %vm652_vm3, %v639_v0, %v642_v1  ;;  %v664_v10 = vsel %vm652_vm3, %v642_v1, %v645_v2 }
  0x8e   : > { %v658_v11 = vsel %vm654_vm6, %v642_v1, %v657_v8  ;;  %v661_v12 = vsel %vm655_vm5, %v648_v4, 920167782  ;;  %v665_v17 = vsel %vm655_vm5, %v651_v5, 1326507024  ;;  %v533_v22 = vshrl.u32 %v1397_v46, %v532_v3 }
  0x8f   : > { %v662_v20 = vsel %vm654_vm6, %v645_v2, %v661_v12  ;;  %v666_v21 = vsel %vm654_vm6, %v648_v4, %v665_v17  ;;  %v535_v23 = vshrl.u32 %v1398_v48, %v532_v3  ;;  %v659_v24 = vsel %vm653_vm4, %v656_v7, %v658_v11 }
  0x90   : > { %v663_v25 = vsel %vm653_vm4, %v660_v9, %v662_v20  ;;  %v667_v26 = vsel %vm653_vm4, %v664_v10, %v666_v21  ;;  %v538_v27 = vshrl.u32 %v1399_v50, %v532_v3  ;;  %v540_v34 = vshll.u32 %v1399_v50, %v531_v42 }
  0x91   : > { %v1664_v28 = vmul.u32.u64.low %v1632_v41, %v667_v26  ;;  %v1665_v29 = vmul.u32.u64.high %v1632_v41, %v667_v26, %v1664_v28  ;;  %v1668_v30 = vmul.u32.u64.low %v1632_v41, %v663_v25  ;;  %v1669_v31 = vmul.u32.u64.high %v1632_v41, %v663_v25, %v1668_v30 }
  0x92   : > { %v536_v32 = vor.u32 %v535_v23, %v534_v6  ;;  %v539_v33 = vor.u32 %v538_v27, %v537_v19  ;;  %v541_v35 = vshrl.u32 %v1400_v52, %v532_v3  ;;  %v543_v37 = vshll.u32 %v1400_v52, %v531_v42 }
  0x93   : > { %v544_v38 = vshrl.u32 %v1401_v54, %v532_v3  ;;  %v546_v39 = vshll.u32 %v1401_v54, %v531_v42  ;;  %v547_v45 = vshrl.u32 %v1402_v62, %v532_v3  ;;  %v675_v47 = vmul.u32 %v1632_v41, %v659_v24 }
  0x94   : > { %v542_v49 = vor.u32 %v541_v35, %v540_v34  ;;  %vm549_vm8 = vcmp.lt.s32.totalorder %v1643_v56, 1  ;;  %vm550_vm9 = vcmp.lt.s32.totalorder %v1643_v56, 2  ;;  %vm677_vm10 = vc.u32 %v1665_v29, %v1668_v30 }
  0x95   : > { %v678_v51 = vadd.s32 1, %v1669_v31  ;;  %v545_v53 = vor.u32 %v544_v38, %v543_v37  ;;  %vm551_vm11 = vcmp.lt.s32.totalorder %v1643_v56, 3  ;;  %v548_v55 = vor.u32 %v547_v45, %v546_v39 }
  0x96   : > { %vm552_vm12 = vcmp.lt.s32.totalorder %v1643_v56, 4  ;;  %v553_v42 = vsel %vm549_vm8, %v533_v22, %v536_v32  ;;  %v557_v57 = vsel %vm549_vm8, %v536_v32, %v539_v33  ;;  %v561_v60 = vsel %vm549_vm8, %v539_v33, %v542_v49 }
  0x97   : > { %v679_v41 = vsel %vm677_vm10, %v678_v51, %v1669_v31  ;;  %v554_v58 = vsel %vm552_vm12, %v542_v49, 2102212464  ;;  %v558_v59 = vsel %vm552_vm12, %v545_v53, 920167782  ;;  %v562_v1 = vsel %vm552_vm12, %v548_v55, 1326507024 }
  0x98   : > { %v680_v61 = vadd.s32 %v679_v41, %v675_v47  ;;  %v555_v63 = vsel %vm551_vm11, %v539_v33, %v554_v58  ;;  %v559_v0 = vsel %vm551_vm11, %v542_v49, %v558_v59  ;;  %v563_v4 = vsel %vm551_vm11, %v545_v53, %v562_v1 }
  0x99   : > { %v556_v2 = vsel %vm550_vm9, %v553_v42, %v555_v63  ;;  %v560_v3 = vsel %vm550_vm9, %v557_v57, %v559_v0  ;;  %v411_v5 = vsel %vm410_vm7, %v1636_v44, 0  ;;  %v564_v7 = vsel %vm550_vm9, %v561_v60, %v563_v4 }
  0x9a   : > { %v681_v6 = vadd.s32 536870912, %v680_v61  ;;  %v1697_v8 = vmul.u32.u64.low %v1634_v43, %v560_v3  ;;  %v1698_v9 = vmul.u32.u64.high %v1634_v43, %v560_v3, %v1697_v8  ;;  %v406_v12 = vand.u32 8388607, %v399_v40 }
  0x9b   : > { %v1702_v10 = vmul.u32.u64.low %v1634_v43, %v564_v7  ;;  %v1703_v11 = vmul.u32.u64.high %v1634_v43, %v564_v7, %v1702_v10  ;;  %v413_v19 = vand.u32 31, %v411_v5  ;;  %v299_v44 = vand.u32 2139095040, %v1629_v36 }
  0x9c   : > { %v1707_v17 = vshrl.u32 %v681_v6, 30  ;;  %v572_v56 = vmul.u32 %v1634_v43, %v556_v2  ;;  %v575_v21 = vadd.s32 1, %v1698_v9  ;;  %v407_v23 = vor.u32 8388608, %v406_v12 }
  0x9d   : > { %v414_v22 = vsub.s32 32, %v413_v19  ;;  %vm574_vm13 = vc.u32 %v1703_v11, %v1697_v8  ;;  %v296_v24 = vand.u32 2147483647, %v1629_v36  ;;  %v1719_v27 = vshrl.u32 %v411_v5, 5 }
  0x9e   : > { %v683_v20 = vshll.u32 %v1707_v17, 30  ;;  %v576_v26 = vsel %vm574_vm13, %v575_v21, %v1698_v9  ;;  %v300_v28 = vshrl.u32 %v299_v44, 23  ;;  %v416_v43 = vshll.u32 %v1397_v46, %v413_v19 }
  0x9f   : > { %v577_v31 = vadd.s32 %v576_v26, %v572_v56  ;;  %v417_v32 = vshrl.u32 %v1398_v48, %v414_v22  ;;  %v419_v33 = vshll.u32 %v1398_v48, %v413_v19  ;;  %v420_v35 = vshrl.u32 %v1399_v50, %v414_v22 }
  0xa0   : > { %v1716_v25 = vsub.s32 %v680_v61, %v683_v20  ;;  %v422_v37 = vshll.u32 %v1399_v50, %v413_v19  ;;  %v423_v38 = vshrl.u32 %v1400_v52, %v414_v22  ;;  %v676_v39 = vadd.s32 %v1668_v30, %v1665_v29 }
  0xa1   : > { %v578_v45 = vadd.s32 536870912, %v577_v31  ;;  %v425_v47 = vshll.u32 %v1400_v52, %v413_v19  ;;  %v1731_v49 = vshll.u32 %v407_v23, 8  ;;  %v415_v53 = vshrl.u32 %v1397_v46, %v414_v22 }
  0xa2   : > { %v686_v34 = vsub.s32 0, %v1716_v25  ;;  %vm434_vm15 = vcmp.lt.s32.totalorder %v1719_v27, 4  ;;  %v1002_v55 = vadd.s32 4294967169, %v300_v28  ;;  %v418_v57 = vor.u32 %v417_v32, %v416_v43 }
  0xa3   : > { %v579_v42 = vshrl.u32 %v578_v45, 30  ;;  %v426_v41 = vshrl.u32 %v1401_v54, %v414_v22  ;;  %v428_v29 = vshll.u32 %v1401_v54, %v413_v19  ;;  %v421_v58 = vor.u32 %v420_v35, %v419_v33 }
  0xa4   : > { %v1015_v51 = vmin.u32 %v686_v34, %v1716_v25  ;;  %v424_v59 = vor.u32 %v423_v38, %v422_v37  ;;  %v429_v60 = vshrl.u32 %v1402_v62, %v414_v22  ;;  %vm431_vm0 = vcmp.lt.s32.totalorder %v1719_v27, 1 }
  0xa5   : > { %v580_v61 = vshll.u32 %v579_v42, 30  ;;  %v427_v63 = vor.u32 %v426_v41, %v425_v47  ;;  %vm433_vm1 = vcmp.lt.s32.totalorder %v1719_v27, 3  ;;  %vm432_vm2 = vcmp.lt.s32.totalorder %v1719_v27, 2 }
  0xa6   : > { %v688_v30 = vclz %v1015_v51  ;;  %v430_v1 = vor.u32 %v429_v60, %v428_v29  ;;  %v436_v2 = vsel %vm434_vm15, %v424_v59, 2102212464  ;;  %vm1747_vm3 = vcmp.le.f32.partialorder %v620_v16, 0.7853982 }
  0xa7   : > { %v706_v4 = vsub.s32 4, %v1707_v17  ;;  %v1752_v5 = vsub.s32 %v577_v31, %v580_v61  ;;  %v435_v6 = vsel %vm431_vm0, %v415_v53, %v418_v57  ;;  %v440_v7 = vsel %vm434_vm15, %v427_v63, 920167782 }
  0xa8   : > { %v1016_v0 = vadd.s32 4294967294, %v688_v30  ;;  %vm519_vm5 = vcmp.lt.s32.totalorder %v1616_v14, 0  ;;  %v439_v9 = vsel %vm431_vm0, %v418_v57, %v421_v58  ;;  %v441_v16 = vsel %vm433_vm1, %v424_v59, %v440_v7 }
  0xa9   : > { %v444_v10 = vsel %vm434_vm15, %v430_v1, 1326507024  ;;  %v583_v19 = vsub.s32 0, %v1752_v5  ;;  %v437_v44 = vsel %vm433_vm1, %v421_v58, %v436_v2  ;;  %v443_v56 = vsel %vm431_vm0, %v421_v58, %v424_v59 }
  0xaa   : > { %vm1017_vm4 = vcmp.lt.s32.totalorder %v1016_v0, 0  ;;  %v445_v23 = vsel %vm433_vm1, %v427_v63, %v444_v10  ;;  %v707_v26 = vsel %vm622_vm14, %v706_v4, %v1707_v17  ;;  %v603_v31 = vsub.s32 4, %v579_v42 }
  0xab   : > { %v691_v12 = vsel %vm1017_vm4, 0, %v1016_v0  ;;  %v1011_v28 = vmin.u32 %v583_v19, %v1752_v5  ;;  %v442_v43 = vsel %vm432_vm2, %v439_v9, %v441_v16  ;;  %vm1781_vm6 = vcmp.le.f32.partialorder %v517_v18, 0.7853982 }
  0xac   : > { %v692_v20 = vsub.s32 32, %v691_v12  ;;  %v693_v21 = vshll.u32 %v1716_v25, %v691_v12  ;;  %v696_v22 = vsub.s32 4294967266, %v691_v12  ;;  %v438_v34 = vsel %vm432_vm2, %v435_v6, %v437_v44 }
  0xad   : > { %v446_v17 = vsel %vm432_vm2, %v443_v56, %v445_v23  ;;  %v585_v35 = vclz %v1011_v28  ;;  %v306_v45 = vadd.s32 1, %v1002_v55  ;;  %v573_v53 = vadd.s32 %v1697_v8, %v1703_v11 }
  0xae   : > { %v694_v32 = vshrl.u32 %v676_v39, %v692_v20  ;;  %v697_v33 = vadd.s32 127, %v696_v22  ;;  %v1790_v37 = vmul.u32.u64.low %v1731_v49, %v446_v17  ;;  %v1791_v38 = vmul.u32.u64.high %v1731_v49, %v446_v17, %v1790_v37 }
  0xaf   : > { %v1794_v51 = vmul.u32.u64.low %v1731_v49, %v442_v43  ;;  %v1795_v18 = vmul.u32.u64.high %v1731_v49, %v442_v43, %v1794_v51  ;;  %v1012_v57 = vadd.s32 4294967294, %v585_v35  ;;  %v303_v27 = vand.u32 8388607, %v296_v24 }
  0xb0   : > { %v695_v39 = vor.u32 %v694_v32, %v693_v21  ;;  %v698_v47 = vshll.u32 %v697_v33, 23  ;;  %vm307_vm7 = vcmp.gt.s32.totalorder %v306_v45, 0  ;;  %v709_v55 = vsel %vm1747_vm3, 0, %v707_v26 }
  0xb1   : > { %v308_v30 = vsel %vm307_vm7, %v306_v45, 0  ;;  %vm1013_vm8 = vcmp.lt.s32.totalorder %v1012_v57, 0  ;;  %v1806_v58 = vsel %vm519_vm5, %v603_v31, %v579_v42  ;;  %v454_v59 = vmul.u32 %v1731_v49, %v438_v34 }
  0xb2   : > { %v699_v41 = vor.u32 4788187, %v698_v47  ;;  %v702_v29 = vcvt.s32.f32 %v695_v39  ;;  %vm456_vm9 = vc.u32 %v1791_v38, %v1794_v51  ;;  %v588_v11 = vsel %vm1013_vm8, 0, %v1012_v57 }
  0xb3   : > { %v457_v60 = vadd.s32 1, %v1795_v18  ;;  %v310_v61 = vand.u32 31, %v308_v30  ;;  %v589_v63 = vsub.s32 32, %v588_v11  ;;  %v590_v0 = vshll.u32 %v1752_v5, %v588_v11 }
  0xb4   : > { %v700_v8 = vand.u32 2147483647, %v699_v41  ;;  %v593_v1 = vsub.s32 4294967266, %v588_v11  ;;  %v304_v2 = vor.u32 8388608, %v303_v27  ;;  %v1813_v6 = vand.u32 3, %v709_v55 }
  0xb5   : > { %v458_v42 = vsel %vm456_vm9, %v457_v60, %v1795_v18  ;;  %v311_v7 = vsub.s32 32, %v310_v61  ;;  %v591_v49 = vshrl.u32 %v573_v53, %v589_v63  ;;  %v606_v16 = vsel %vm1781_vm6, 0, %v1806_v58  ;;  %v797_v41 = vld [vmem:[%s1587_s13] sm:$0xc] }
  0xb6   : > { %v703_v4 = vmul.f32 %v702_v29, %v700_v8  ;;  %v594_v9 = vadd.s32 127, %v593_v1  ;;  %v459_v10 = vadd.s32 %v458_v42, %v454_v59  ;;  %v1819_v19 = vshrl.u32 %v308_v30, 5 }
  0xb7   : > { %v313_v5 = vshll.u32 %v1397_v46, %v310_v61  ;;  %v316_v44 = vshll.u32 %v1398_v48, %v310_v61  ;;  %v592_v56 = vor.u32 %v591_v49, %v590_v0  ;;  %v314_v22 = vshrl.u32 %v1398_v48, %v311_v7  ;;  %v814_v49 = vld [vmem:[%s1587_s13] sm:$0x3] }
  0xb8   : > { %v704_v12 = vxor.u32 2147483648, %v703_v4  ;;  %v595_v20 = vshll.u32 %v594_v9, 23  ;;  %v460_v21 = vadd.s32 536870912, %v459_v10  ;;  %v317_v26 = vshrl.u32 %v1399_v50, %v311_v7 }
  0xb9   : > { %v319_v28 = vshll.u32 %v1399_v50, %v310_v61  ;;  %v320_v31 = vshrl.u32 %v1400_v52, %v311_v7  ;;  %v599_v33 = vcvt.s32.f32 %v592_v56  ;;  %v312_v48 = vshrl.u32 %v1397_v46, %v311_v7 }
  0xba   : > { %v705_v23 = vsel %vm622_vm14, %v704_v12, %v703_v4  ;;  %v596_v32 = vor.u32 4788187, %v595_v20  ;;  %v1832_v34 = vshrl.u32 %v460_v21, 30  ;;  %v322_v17 = vshll.u32 %v1400_v52, %v310_v61 }
  0xbb   : > { %v708_v43 = vsel %vm1747_vm3, %v1614_v13, %v705_v23  ;;  %v323_v35 = vshrl.u32 %v1401_v54, %v311_v7  ;;  %v315_v45 = vor.u32 %v314_v22, %v313_v5  ;;  %v318_v39 = vor.u32 %v317_v26, %v316_v44  ;;  %v815_v5 = vld [vmem:[%s1587_s13 + $0x8] sm:$0x3] }
  0xbc   : > { %1171 = vcosq.f32 %v708_v43  ;;  %v597_v50 = vand.u32 2147483647, %v596_v32  ;;  %v462_v37 = vshll.u32 %v1832_v34, 30  ;;  %v325_v47 = vshll.u32 %v1401_v54, %v310_v61 }
  0xbd   : > { %1173 = vsinq.f32 %v708_v43  ;;  %v324_v3 = vor.u32 %v323_v35, %v322_v17  ;;  %v326_v18 = vshrl.u32 %v1402_v62, %v311_v7  ;;  %v321_v46 = vor.u32 %v320_v31, %v319_v28 }
  0xbe   : > { %v600_v53 = vmul.f32 %v599_v33, %v597_v50  ;;  %v1840_v57 = vsub.s32 %v459_v10, %v462_v37  ;;  %vm328_vm10 = vcmp.lt.s32.totalorder %v1819_v19, 1  ;;  %vm330_vm11 = vcmp.lt.s32.totalorder %v1819_v19, 3 }
  0xbf   : > { %v327_v52 = vor.u32 %v326_v18, %v325_v47  ;;  %vm331_vm12 = vcmp.lt.s32.totalorder %v1819_v19, 4  ;;  %v1845_v27 = vshll.u32 %v304_v2, 8  ;;  %vm718_vm13 = vcmp.eq.s32.totalorder %v1813_v6, 2 }
  0xc0   : > { %v601_v29 = vxor.u32 2147483648, %v600_v53  ;;  %v465_v54 = vsub.s32 0, %v1840_v57  ;;  %v332_v62 = vsel %vm328_vm10, %v312_v48, %v315_v45  ;;  %v333_v55 = vsel %vm331_vm12, %v321_v46, 2102212464 }
  0xc1   : > { %vm715_vm14 = vcmp.eq.s32.totalorder %v1813_v6, 0  ;;  %vm329_vm15 = vcmp.lt.s32.totalorder %v1819_v19, 2  ;;  %v334_v30 = vsel %vm330_vm11, %v318_v39, %v333_v55  ;;  %v336_v59 = vsel %vm328_vm10, %v315_v45, %v318_v39 }
  0xc2   : > { %v337_v8 = vsel %vm331_vm12, %v324_v3, 920167782  ;;  %vm714_vm0 = vcmp.lt.s32.totalorder %v1813_v6, 2  ;;  %v602_v11 = vsel %vm519_vm5, %v601_v29, %v600_v53  ;;  %v455_v60 = vadd.s32 %v1794_v51, %v1791_v38  ;;  %v798_v38 = vld [vmem:[%s1587_s13 + $0x8] sm:$0xc]  ;;  %s840_s13 = scalar_lea.sflag [#allocation4], %s261_s3 }
  0xc3   : > { %v1007_v61 = vmin.u32 %v465_v54, %v1840_v57  ;;  %v800_v63 = vmul.f32 %v797_v41, %v797_v41  ;;  %vm712_vm1 = vweird.f32 %v1614_v13  ;;  %v605_v0 = vsel %vm1781_vm6, %v1616_v14, %v602_v11 }
  0xc4   : > { %v335_v1 = vsel %vm329_vm15, %v332_v62, %v334_v30  ;;  %v338_v2 = vsel %vm330_vm11, %v321_v46, %v337_v8  ;;  %v340_v4 = vsel %vm328_vm10, %v318_v39, %v321_v46  ;;  %1175 = vcosq.f32 %v605_v0 }
  0xc5   : > { %v467_v51 = vclz %v1007_v61  ;;  %v339_v42 = vsel %vm329_vm15, %v336_v59, %v338_v2  ;;  %v341_v7 = vsel %vm331_vm12, %v327_v52, 1326507024  ;;  %1177 = vsinq.f32 %v605_v0 }
  0xc6   : > { %v342_v9 = vsel %vm330_vm11, %v324_v3, %v341_v7  ;;  %v1887_v10 = vmul.u32.u64.low %v1845_v27, %v339_v42  ;;  %v1888_v12 = vmul.u32.u64.high %v1845_v27, %v339_v42, %v1887_v10  ;;  %v351_v20 = vmul.u32 %v1845_v27, %v335_v1 }
  0xc7   : > { %v1008_v44 = vadd.s32 4294967294, %v467_v51  ;;  %v343_v56 = vsel %vm329_vm15, %v340_v4, %v342_v9  ;;  %v801_v21 = vmul.f32 %v798_v38, %v798_v38  ;;  %vm802_vm2 = vcmask 1043458  }
  0xc8   : > { %v1896_v22 = vmul.u32.u64.low %v1845_v27, %v343_v56  ;;  %v1897_v23 = vmul.u32.u64.high %v1845_v27, %v343_v56, %v1896_v22  ;;  %v1018_v26 = vadd.f32 -1.0, %v814_v49  ;;  %v803_v31 = vsel %vm802_vm2, %v800_v63, 0.0 }
  0xc9   : > { %v1172_v28 = vpop.eup %1171  ;;  %vm1009_vm3 = vcmp.lt.s32.totalorder %v1008_v44, 0  ;;  %v804_v43 = vsel %vm802_vm2, %v801_v21, 0.0  ;;  %v1019_v32 = vadd.f32 -1.0, %v815_v5  ;;  %v354_v19 = vadd.s32 1, %v1888_v12 }
  0xca   : > { %v1174_v33 = vpop.eup %1173  ;;  %v719_v48 = vxor.u32 2147483648, %v1172_v28  ;;  %v470_v17 = vsel %vm1009_vm3, 0, %v1008_v44  ;;  %v805_v35 = vadd.f32 %v804_v43, %v803_v31  ;;  %v610_v47 = vand.u32 3, %v606_v16 }
  0xcb   : > { %v716_v50 = vxor.u32 2147483648, %v1174_v33  ;;  %v471_v37 = vsub.s32 32, %v470_v17  ;;  %v472_v45 = vshll.u32 %v1840_v57, %v470_v17  ;;  %v475_v39 = vsub.s32 4294967266, %v470_v17 }
  0xcc   : > { %v720_v3 = vsel %vm718_vm13, %v719_v48, %v1174_v33  ;;  %vm353_vm4 = vc.u32 %v1897_v23, %v1887_v10  ;;  %806 = vadd.xlane.f32.xlu0 %v805_v35  ;;  %v819_v18 = vmax.f32 %v1018_v26, 0.0  ;;  %v820_v25 = vmax.f32 %v1019_v32, 0.0 }
  0xcd   : > { %v717_v53 = vsel %vm715_vm14, %v1172_v28, %v716_v50  ;;  %v473_v46 = vshrl.u32 %v455_v60, %v471_v37  ;;  %v476_v52 = vadd.s32 127, %v475_v39  ;;  %v355_v57 = vsel %vm353_vm4, %v354_v19, %v1888_v12 }
  0xce   : > { %v721_v27 = vsel %vm714_vm0, %v717_v53, %v720_v3  ;;  %v356_v41 = vadd.s32 %v355_v57, %v351_v20  ;;  %v821_v29 = vsub.f32 0.0, %v814_v49  ;;  %v822_v62 = vsub.f32 0.0, %v815_v5 }
  0xcf   : > { %v722_v58 = vsel %vm712_vm1, nan, %v721_v27  ;;  %v474_v16 = vor.u32 %v473_v46, %v472_v45  ;;  %v477_v54 = vshll.u32 %v476_v52, 23  ;;  %vm827_vm5 = vcmask 1041408  }
  0xd0   : > { %754 = vmatprep.subr.mxu0 %v722_v58  ;;  %v357_v55 = vadd.s32 536870912, %v356_v41  ;;  %v823_v30 = vmax.f32 %v821_v29, 0.0  ;;  %v824_v11 = vmax.f32 %v822_v62, 0.0  ;;  %vm615_vm6 = vcmp.eq.s32.totalorder %v610_v47, 2 }
  0xd1   : > { %v478_v59 = vor.u32 4788187, %v477_v54  ;;  %v481_v8 = vcvt.s32.f32 %v474_v16  ;;  %v1176_v60 = vpop.eup %1175  ;;  %vm612_vm7 = vcmp.eq.s32.totalorder %v610_v47, 0  ;;  %vm611_vm8 = vcmp.lt.s32.totalorder %v610_v47, 2 }
  0xd2   : > { %v1916_v6 = vshrl.u32 %v357_v55, 30  ;;  %v825_v61 = vadd.f32 %v823_v30, %v819_v18  ;;  %v1178_v63 = vpop.eup %1177  ;;  %v616_v0 = vxor.u32 2147483648, %v1176_v60  ;;  %v826_v1 = vadd.f32 %v824_v11, %v820_v25 }
  0xd3   : > { %v479_v13 = vand.u32 2147483647, %v478_v59  ;;  %v613_v2 = vxor.u32 2147483648, %v1178_v63  ;;  %vm609_vm9 = vweird.f32 %v1616_v14  ;;  %vm401_vm10 = vcmp.lt.s32.totalorder %v1618_v15, 0 }
  0xd4   : > { %v359_v4 = vshll.u32 %v1916_v6, 30  ;;  %v828_v38 = vsel %vm827_vm5, %v825_v61, 0.0  ;;  %v617_v51 = vsel %vm615_vm6, %v616_v0, %v1178_v63  ;;  %v829_v7 = vsel %vm827_vm5, %v826_v1, 0.0  ;;  %v799_v63 = vld [vmem:[%s1607_s18] sm:$0x3] }
  0xd5   : > { %v482_v42 = vmul.f32 %v481_v8, %v479_v13  ;;  %v614_v49 = vsel %vm612_vm7, %v1176_v60, %v613_v2  ;;  %v830_v12 = vadd.f32 %v829_v7, %v828_v38  ;;  %vm1925_vm11 = vcmp.le.f32.partialorder %v399_v40, 0.7853982  ;;  %v816_v2 = vld [vmem:[%s1607_s18 + $0x2] sm:$0x3] }
  0xd6   : > { %v360_v9 = vsub.s32 %v356_v41, %v359_v4  ;;  %v618_v5 = vsel %vm611_vm8, %v614_v49, %v617_v51  ;;  %v485_v22 = vsub.s32 4, %v1832_v34  ;;  %v352_v32 = vadd.s32 %v1887_v10, %v1897_v23 }
  0xd7   : > { %v483_v56 = vxor.u32 2147483648, %v482_v42  ;;  %v619_v20 = vsel %vm609_vm9, nan, %v618_v5  ;;  %831 = vadd.xlane.f32.xlu0 %v830_v12  ;;  %vm491_vm0 = vweird.f32 %v1618_v15  ;;  %vm298_vm1 = vcmp.lt.s32.totalorder %v1629_v36, 0 }
  0xd8   : > { %v362_v21 = vsub.s32 0, %v360_v9  ;;  %755 = vmatpush1.xpose.msra.mxu0 %v619_v20  ;;  %v486_v31 = vsel %vm401_vm10, %v485_v22, %v1832_v34  ;;  %vm297_vm2 = vcmp.le.f32.partialorder %v296_v24, 0.7853982  ;;  %v382_v16 = vsub.s32 4, %v1916_v6 }
  0xd9   : > { %v484_v14 = vsel %vm401_vm10, %v483_v56, %v482_v42  ;;  %v488_v33 = vsel %vm1925_vm11, 0, %v486_v31  ;;  %vm388_vm6 = vweird.f32 %v1629_v36  ;;  %vm812_vm7 = vcmask 1024  }
  0xda   : > { %v487_v26 = vsel %vm1925_vm11, %v1618_v15, %v484_v14  ;;  %v1003_v28 = vmin.u32 %v362_v21, %v360_v9  ;;  %v492_v50 = vand.u32 3, %v488_v33  ;;  %v383_v15 = vsel %vm298_vm1, %v382_v16, %v1916_v6 }
  0xdb   : > { %1179 = vcosq.f32 %v487_v26  ;;  %v385_v62 = vsel %vm297_vm2, 0, %v383_v15 }
  0xdc   : > { %1181 = vsinq.f32 %v487_v26  ;;  %v364_v40 = vclz %v1003_v28  ;;  %vm497_vm13 = vcmp.eq.s32.totalorder %v492_v50, 2  ;;  %vm494_vm14 = vcmp.eq.s32.totalorder %v492_v50, 0 }
  0xdd   : > { %vm493_vm15 = vcmp.lt.s32.totalorder %v492_v50, 2  ;;  %v389_v55 = vand.u32 3, %v385_v62 }
  0xde   : > { %v1004_v43 = vadd.s32 4294967294, %v364_v40 }
  0xdf   : > { %vm394_vm3 = vcmp.eq.s32.totalorder %v389_v55, 2  ;;  %vm391_vm4 = vcmp.eq.s32.totalorder %v389_v55, 0  ;;  %vm390_vm5 = vcmp.lt.s32.totalorder %v389_v55, 2 }
  0xe0   : > { %vm1005_vm12 = vcmp.lt.s32.totalorder %v1004_v43, 0 }
  0xe1   : > { %v367_v48 = vsel %vm1005_vm12, 0, %v1004_v43 }
  0xe2   : > { %v368_v17 = vsub.s32 32, %v367_v48  ;;  %v369_v19 = vshll.u32 %v360_v9, %v367_v48  ;;  %v372_v35 = vsub.s32 4294967266, %v367_v48 }
  0xe4   : > { %v370_v37 = vshrl.u32 %v352_v32, %v368_v17  ;;  %v373_v45 = vadd.s32 127, %v372_v35 }
  0xe6   : > { %v371_v39 = vor.u32 %v370_v37, %v369_v19  ;;  %v374_v3 = vshll.u32 %v373_v45, 23 }
  0xe8   : > { %v1180_v47 = vpop.eup %1179  ;;  %v375_v34 = vor.u32 4788187, %v374_v3  ;;  %v378_v18 = vcvt.s32.f32 %v371_v39 }
  0xe9   : > { %v1182_v53 = vpop.eup %1181  ;;  %v498_v10 = vxor.u32 2147483648, %v1180_v47 }
  0xea   : > { %v495_v23 = vxor.u32 2147483648, %v1182_v53  ;;  %v376_v46 = vand.u32 2147483647, %v375_v34 }
  0xeb   : > { %v499_v52 = vsel %vm497_vm13, %v498_v10, %v1182_v53 }
  0xec   : > { %v496_v57 = vsel %vm494_vm14, %v1180_v47, %v495_v23  ;;  %v379_v27 = vmul.f32 %v378_v18, %v376_v46 }
  0xed   : > { %v500_v41 = vsel %vm493_vm15, %v496_v57, %v499_v52 }
  0xee   : > { %v501_v25 = vsel %vm491_vm0, nan, %v500_v41  ;;  %v380_v29 = vxor.u32 2147483648, %v379_v27 }
  0xef   : > { %788 = vmatprep.mubr.f32.mxu0 %v501_v25 }
  0xf0   : > { %v381_v58 = vsel %vm298_vm1, %v380_v29, %v379_v27 }
  0xf1   : > { %v384_v54 = vsel %vm297_vm2, %v1629_v36, %v381_v58 }
  0xf2   : > { %1183 = vcosq.f32 %v384_v54 }
  0xf3   : > { %1185 = vsinq.f32 %v384_v54 }
  0xff   : > { %v1184_v30 = vpop.eup %1183 }
 0x100   : > { %v1186_v59 = vpop.eup %1185  ;;  %v395_v24 = vxor.u32 2147483648, %v1184_v30 }
 0x101   : > { %v392_v8 = vxor.u32 2147483648, %v1186_v59 }
 0x102   : > { %v396_v11 = vsel %vm394_vm3, %v395_v24, %v1186_v59 }
 0x103   : > { %v393_v60 = vsel %vm391_vm4, %v1184_v30, %v392_v8 }
 0x104   : > { %v397_v61 = vsel %vm390_vm5, %v393_v60, %v396_v11 }
 0x105   : > { %v398_v6 = vsel %vm388_vm6, nan, %v397_v61 }
 0x106   : > { %789 = vmatmul.mubr.f32.vlgmr.msra.gmra.mxu0 %v398_v6 }
 0x155   : > { %v807_v0 = vpop.xlane.xlu0 %806 }
 0x156   : > { %v809_v13 = vrot.slane %v807_v0, 2 }
 0x158   : > { %v811_v1 = vadd.f32 %v809_v13, %v799_v63 }
 0x15a   : > { %813 = vst.msk [vmem:[%s1607_s18] sm:$0x3] %vm812_vm7, %v811_v1 }
 0x160   : > { %v832_v4 = vpop.xlane.xlu0 %831 }
 0x161   : > { %v833_v38 = vadd.f32 %v832_v4, %v816_v2 }
 0x163   : > { %834 = vst.msk [vmem:[%s1607_s18 + $0x2] sm:$0x3] %vm812_vm7, %v833_v38 }
 0x164   : > { %1280 = shalt.err (!%p1277_p4)
}
 0x165   : > { %s1281_s14 = scalar_lea.hbm %s854_s21, 128  ;;  %s1285_s29 = scalar_lea.hbm %s2060_s5, 256 }
 0x166   : > { %p1282_p6 = scmp.ne.s32.totalorder %s854_s21, %s1281_s14  ;;  %p1286_p13 = scmp.lt.s32.totalorder %s854_s21, %s2060_s5 }
 0x167   : > { %p1287_p0 = scmp.lt.s32.totalorder %s1285_s29, %s1281_s14 }
 0x168   : > { %p1283_p10 = pnand %p1282_p6, %p2061_p8 }
 0x169   : > { %p1288_p5 = por %p1287_p0, %p1286_p13 }
 0x16a   : > { %p1284_p11 = pneg %p1283_p10 }
 0x16c   : > { %p1289_p7 = pnand %p1288_p5, %p1284_p11 }
 0x16e   : > { %1292 = shalt.err (!%p1289_p7)
}
 0x16f   : > { %1051 = dma.vmem_to_hbm [thread:$0]  (%p2061_p8), %s857_s12, 128, %s854_s21, %s840_s13   ;;  %v723_v36 = vld [vmem:[%s1605_s9] sm:$0xff]  ;;  %vm795_vm8 = vcmask 64512  }
 0x1c6   : > { %v790_v51 = vpop.f32.mrf.mxu0 }
 0x1c7   : > { %v794_v42 = vadd.f32 %v790_v51, %v723_v36 }
 0x1c8   : > { %v792_v7 = vpop.f32.mrf.mxu0 }
 0x1c9   : > { %796 = vst.msk [vmem:[%s1605_s9] sm:$0xff] %vm795_vm8, %v794_v42 }
 0x1ca PF: > { %s2062_s10 = sld [smem:[#allocation12_spill]]  ;;  %p1073_p9 = scmp.ge.s32.totalorder %s1391_s25, 2 }
 0x1cb   : > { %s2063_s4 = sld [smem:[#allocation16_spill]] }
 0x1d0   : > { %s875_s1 = sand.u32 1, %s2062_s10  }
 0x1d1   : > { %p2064_p12 = scmp.ne.s32.totalorder %s2063_s4, 0  ;;  %s876_s15 = scalar_lea.sflag [#allocation4], %s875_s1 }
 0x1d3   : > { %p1065_p2 = pnand %p1073_p9, %p2064_p12 }
 0x1d5   : > { %p1066_p3 = pneg %p1065_p2 }
 0x1d7   : > { %1346 = dma.done.wait (%p1066_p3), %s876_s15, 128  }
 0x1d8   : > { %1348 = vsyncadd (%p1066_p3), %s876_s15, 4294967168  ;;  %s22_s25 = sadd.s32 1, %s1391_s25   ;;  %s2065_s21 = sld [smem:[#allocation14_spill]] }
 0x1d9   : > { %p19_p8 = scmp.ge.s32.totalorder %s22_s25, 6   ;;  %s2066_s15 = smov %s1355_s16 }
 0x1da   : > { %s2067_s16 = smov %s1359_s17  ;;  %s2068_s17 = smov %s1564_s2 }
 0x1db   : > { %s2069_s18 = smov %s1367_s19  ;;  %s2070_s19 = smov %s1371_s20 }
 0x1dc   : > { %s2071_s20 = smov %s1567_s23  ;;  %s2072_s22 = smov %s1387_s24 }
 0x1dd   : > { %s2073_s23 = smov %s2076_s7  ;;  %s2074_s24 = smov %s2080_s8 }
 0x1de   :  { %21 = sbr.rel (!%p19_p8) target bundleno = 15 (0xf), region = 102 }
 0x1e3   :  { %881 = vsyncpa [#allocation3], 1 }
 0x1e4   :  { %883 = vsyncpa [#allocation3 + $0x1], 1 }
 0x1e5   :  { %884 = vsyncpa [#allocation6], 1 }
 0x1e6   :  { %885 = vsyncpa [#allocation4], 1 }
 0x1e7   :  { %887 = vsyncpa [#allocation4 + $0x1], 1 }

</bundles_post_ra>
